<compile_context>
chip_gen: v7x
topology: tpu7x:2x2x1
jax: 0.10.0
libtpu: 0.0.40
codegen_flags: <defaults>
</compile_context>

<pallas_src>
import jax
import jax.numpy as jnp
from jax.experimental import pallas as pl
from jax.experimental.pallas import tpu as pltpu

_LANE = 128
_VMEM_WORKING_BUDGET = 40 * 1024 * 1024   # target working set used for the tile clamp
_VMEM_LIMIT_BYTES = 56 * 1024 * 1024      # > v5e 16 MiB default scoped, < v7x 64 MiB/TC


def _round_up(a: int, m: int) -> int:
    return ((a + m - 1) // m) * m


def _lane_pad(n: int) -> int:
    # Narrow last dims are padded to a full 128-lane vreg row in VMEM.
    return _round_up(max(int(n), 1), _LANE)


def _vmem_bytes_per_row(in_dim: int, h1_dim: int, h2_dim: int, x_itemsize: int) -> int:
    """Conservative per-batch-row VMEM estimate (everything lane-pads to 128)."""
    return (2 * _lane_pad(in_dim) * x_itemsize   # x tile, double-buffered by BlockSpec
            + _lane_pad(in_dim) * 2              # in-kernel bf16 copy of x
            + _lane_pad(h1_dim) * (4 + 2)        # h1 in f32 + bf16
            + _lane_pad(h2_dim) * (4 + 4)        # h2 in f32 + elementwise temp
            + 2 * 512)                           # [tb,1] out tile (1 lane/vreg), dbl-buffered


def _listnet_kernel(x_ref, w1_ref, b1_ref, w2_ref, b2_ref, w3_ref, b3_ref, o_ref):
    # Layer 1: relu(x @ W1 + b1)  -- bf16 operands, f32 accumulate on the MXU.
    # (astype is a no-op if the caller already streams x in bf16.)
    x = x_ref[...].astype(jnp.bfloat16)
    h1 = jnp.dot(x, w1_ref[...], preferred_element_type=jnp.float32)
    h1 = jnp.maximum(h1 + b1_ref[...], 0.0)

    # Layer 2: relu(h1 @ W2 + b2)
    h2 = jnp.dot(h1.astype(jnp.bfloat16), w2_ref[...],
                 preferred_element_type=jnp.float32)
    h2 = jnp.maximum(h2 + b2_ref[...], 0.0)

    # Layer 3 (scorer, out_features=1): VPU multiply + XLU lane reduction instead
    # of an N=1 MXU matmul; bias is a scalar read from SMEM. Final ReLU kept.
    y = jnp.sum(h2 * w3_ref[...], axis=-1, keepdims=True) + b3_ref[0]
    o_ref[...] = jnp.maximum(y, 0.0).astype(o_ref.dtype)


def listnet_forward(x, params, *, batch_tile: int = 8192):
    """x: [B, in_dim] (f32 or bf16). params: dict (w1/w2 pre-transposed [fan_in, fan_out])."""
    w1, b1 = params["w1"], params["b1"]
    w2, b2 = params["w2"], params["b2"]
    w3, b3 = params["w3"], params["b3"]

    B, in_dim = x.shape
    h1_dim = w1.shape[1]
    h2_dim = w2.shape[1]

    # Batch tile: multiple of 16 (covers bf16 sublane packing), no larger than
    # the (16-aligned) batch, clamped so the double-buffered working set fits
    # the VMEM budget (v7x has only 64 MiB per TensorCore).
    tb = max(16, _round_up(batch_tile, 16))
    tb = min(tb, _round_up(B, 16))
    per_row = _vmem_bytes_per_row(in_dim, h1_dim, h2_dim, x.dtype.itemsize)
    vmem_rows = max(16, (_VMEM_WORKING_BUDGET // per_row) // 16 * 16)
    tb = min(tb, vmem_rows)

    # No input padding: ragged last block reads garbage rows (rows independent),
    # OOB output rows are masked on writeback.  For v7x, large batches give
    # num_tiles >= 2 so both TensorCores get work via the "parallel" axis.
    num_tiles = pl.cdiv(B, tb)

    flops = 2 * B * (in_dim * h1_dim + h1_dim * h2_dim + h2_dim)
    bytes_accessed = (
        x.size * x.dtype.itemsize
        + sum(int(p.size) * p.dtype.itemsize for p in (w1, b1, w2, b2, w3, b3))
        + B * x.dtype.itemsize
    )
    cost = pl.CostEstimate(flops=int(flops), transcendentals=0,
                           bytes_accessed=int(bytes_accessed))

    out = pl.pallas_call(
        _listnet_kernel,
        out_shape=jax.ShapeDtypeStruct((B, 1), x.dtype),
        grid=(num_tiles,),
        in_specs=[
            # x: streamed per batch tile (double-buffered by Pallas).
            pl.BlockSpec((tb, in_dim), lambda i: (i, 0)),
            # Weights/biases: constant block index -> loaded once, VMEM-resident.
            pl.BlockSpec((in_dim, h1_dim), lambda i: (0, 0)),
            pl.BlockSpec((1, h1_dim), lambda i: (0, 0)),
            pl.BlockSpec((h1_dim, h2_dim), lambda i: (0, 0)),
            pl.BlockSpec((1, h2_dim), lambda i: (0, 0)),
            pl.BlockSpec((1, h2_dim), lambda i: (0, 0)),
            # b3 is a lone scalar: keep it in SMEM.
            pl.BlockSpec(memory_space=pltpu.MemorySpace.SMEM),
        ],
        out_specs=pl.BlockSpec((tb, 1), lambda i: (i, 0)),
        compiler_params=pltpu.CompilerParams(
            dimension_semantics=("parallel",),
            vmem_limit_bytes=_VMEM_LIMIT_BYTES,
        ),
        cost_estimate=cost,
    )(x, w1, b1, w2, b2, w3, b3)

    return out


def init_params(key, in_dim, hidden_dim_1, hidden_dim_2):
    """Init mimicking torch.nn.Linear's U(-1/sqrt(fan_in), +1/sqrt(fan_in)).

    w1/w2 stored transposed as [fan_in, fan_out] (bf16 for the MXU);
    w3 stored as the row [1, hidden_dim_2]; biases in f32; b3 scalar (SMEM).
    """
    ks = jax.random.split(key, 6)

    def uni(k, shape, fan_in):
        bound = 1.0 / float(fan_in) ** 0.5
        return jax.random.uniform(k, shape, jnp.float32, -bound, bound)

    w1 = uni(ks[0], (in_dim, hidden_dim_1), in_dim).astype(jnp.bfloat16)
    b1 = uni(ks[1], (1, hidden_dim_1), in_dim)
    w2 = uni(ks[2], (hidden_dim_1, hidden_dim_2), hidden_dim_1).astype(jnp.bfloat16)
    b2 = uni(ks[3], (1, hidden_dim_2), hidden_dim_1)
    w3 = uni(ks[4], (1, hidden_dim_2), hidden_dim_2)          # row form, f32 (VPU)
    b3 = uni(ks[5], (1,), hidden_dim_2)                       # scalar, SMEM
    return {"w1": w1, "b1": b1, "w2": w2, "b2": b2, "w3": w3, "b3": b3}


def _reference(x, p):
    """Pure-JAX reference with the identical bf16-matmul / f32-elementwise recipe."""
    h1 = jnp.dot(x.astype(jnp.bfloat16), p["w1"], preferred_element_type=jnp.float32)
    h1 = jnp.maximum(h1 + p["b1"], 0.0)
    h2 = jnp.dot(h1.astype(jnp.bfloat16), p["w2"], preferred_element_type=jnp.float32)
    h2 = jnp.maximum(h2 + p["b2"], 0.0)
    y = jnp.sum(h2 * p["w3"], axis=-1, keepdims=True) + p["b3"][0]
    return jnp.maximum(y, 0.0)


if __name__ == "__main__":
    key = jax.random.PRNGKey(0)
    kx, kp = jax.random.split(key)

    # Small shapes consistent with the module (ranking MLP: in=16, h1=h2=32).
    B, in_dim, h1_dim, h2_dim = 300, 16, 32, 32
    x = jax.random.normal(kx, (B, in_dim), dtype=jnp.float32)
    params = init_params(kp, in_dim, h1_dim, h2_dim)

    y_ref = _reference(x, params)

    # Multi-step ragged grid (300 rows -> 3 tiles of 128, last block partial).
    y_tiled = jax.block_until_ready(listnet_forward(x, params, batch_tile=128))
    assert y_tiled.shape == (B, 1), y_tiled.shape
    assert jnp.allclose(y_tiled, y_ref, atol=1e-2, rtol=1e-2), "mismatch (tiled, ragged)"

    # Default large-tile path (single ragged 304-row block here; 8192-row
    # VMEM-clamped tiles at real batch sizes).
    y_big = jax.block_until_ready(listnet_forward(x, params))
    assert y_big.shape == (B, 1), y_big.shape
    assert jnp.allclose(y_big, y_ref, atol=1e-2, rtol=1e-2), "mismatch (default tile)"

    # bf16 input streaming contract: halves the dominant HBM read stream, the
    # in-kernel cast becomes a no-op.  (bf16 output rounding only.)
    x_bf16 = x.astype(jnp.bfloat16)
    y_bf16 = jax.block_until_ready(listnet_forward(x_bf16, params))
    y_ref_bf16 = _reference(x_bf16, params)
    assert y_bf16.shape == (B, 1), y_bf16.shape
    assert jnp.allclose(y_bf16.astype(jnp.float32), y_ref_bf16, atol=5e-2, rtol=5e-2), \
        "mismatch (bf16 input)"

    print("KERNEL_OK")
</pallas_src>

<mosaic_0001>
module attributes {stable_mosaic.version = 11 : i64} {
  func.func @_listnet_kernel(%arg0: i32, %arg1: memref<128x16xf32, #tpu.memory_space<vmem>>, %arg2: memref<16x32xbf16, #tpu.memory_space<vmem>>, %arg3: memref<1x32xf32, #tpu.memory_space<vmem>>, %arg4: memref<32x32xbf16, #tpu.memory_space<vmem>>, %arg5: memref<1x32xf32, #tpu.memory_space<vmem>>, %arg6: memref<1x32xf32, #tpu.memory_space<vmem>>, %arg7: memref<1xf32, #tpu.memory_space<smem>>, %arg8: memref<128x1xf32, #tpu.memory_space<vmem>>) attributes {dimension_semantics = [#tpu.dimension_semantics<parallel>], iteration_bounds = array<i64: 3>, scalar_prefetch = 0 : i64, scratch_operands = 0 : i64, tpu.core_type = #tpu.core_type<tc>, window_params = [{transform_indices = @transform_0, window_bounds = array<i64: 128, 16>}, {pipeline_mode = #tpu.pipeline_mode<synchronous>, transform_indices = @transform_1, window_bounds = array<i64: 16, 32>}, {pipeline_mode = #tpu.pipeline_mode<synchronous>, transform_indices = @transform_2, window_bounds = array<i64: 1, 32>}, {pipeline_mode = #tpu.pipeline_mode<synchronous>, transform_indices = @transform_3, window_bounds = array<i64: 32, 32>}, {pipeline_mode = #tpu.pipeline_mode<synchronous>, transform_indices = @transform_4, window_bounds = array<i64: 1, 32>}, {pipeline_mode = #tpu.pipeline_mode<synchronous>, transform_indices = @transform_5, window_bounds = array<i64: 1, 32>}, {transform_indices = @transform_6, window_bounds = array<i64: 1>}, {transform_indices = @transform_7, window_bounds = array<i64: 128, 1>}]} {
    %c0 = arith.constant 0 : index
    %c0_0 = arith.constant 0 : index
    %0 = vector.load %arg1[%c0, %c0_0] : memref<128x16xf32, #tpu.memory_space<vmem>>, vector<128x16xf32>
    %1 = arith.truncf %0 : vector<128x16xf32> to vector<128x16xbf16>
    %c0_1 = arith.constant 0 : index
    %c0_2 = arith.constant 0 : index
    %2 = vector.load %arg2[%c0_1, %c0_2] : memref<16x32xbf16, #tpu.memory_space<vmem>>, vector<16x32xbf16>
    %cst = arith.constant dense<0.000000e+00> : vector<128x32xf32>
    %3 = tpu.matmul %1, %2, %cst {dimension_numbers = #tpu.dot_dimension_numbers<[1], [0], [0], [1], [0, 0, 1, 1], [], []>} : vector<128x16xbf16>, vector<16x32xbf16>, vector<128x32xf32> -> vector<128x32xf32>
    %c0_3 = arith.constant 0 : index
    %c0_4 = arith.constant 0 : index
    %4 = vector.load %arg3[%c0_3, %c0_4] : memref<1x32xf32, #tpu.memory_space<vmem>>, vector<1x32xf32>
    %5 = vector.broadcast %4 : vector<1x32xf32> to vector<128x32xf32>
    %6 = arith.addf %3, %5 : vector<128x32xf32>
    %cst_5 = arith.constant 0.000000e+00 : f32
    %7 = vector.broadcast %cst_5 : f32 to vector<128x32xf32>
    %8 = arith.maximumf %6, %7 : vector<128x32xf32>
    %9 = arith.truncf %8 : vector<128x32xf32> to vector<128x32xbf16>
    %c0_6 = arith.constant 0 : index
    %c0_7 = arith.constant 0 : index
    %10 = vector.load %arg4[%c0_6, %c0_7] : memref<32x32xbf16, #tpu.memory_space<vmem>>, vector<32x32xbf16>
    %cst_8 = arith.constant dense<0.000000e+00> : vector<128x32xf32>
    %11 = tpu.matmul %9, %10, %cst_8 {dimension_numbers = #tpu.dot_dimension_numbers<[1], [0], [0], [1], [0, 0, 1, 1], [], []>} : vector<128x32xbf16>, vector<32x32xbf16>, vector<128x32xf32> -> vector<128x32xf32>
    %c0_9 = arith.constant 0 : index
    %c0_10 = arith.constant 0 : index
    %12 = vector.load %arg5[%c0_9, %c0_10] : memref<1x32xf32, #tpu.memory_space<vmem>>, vector<1x32xf32>
    %13 = vector.broadcast %12 : vector<1x32xf32> to vector<128x32xf32>
    %14 = arith.addf %11, %13 : vector<128x32xf32>
    %cst_11 = arith.constant 0.000000e+00 : f32
    %15 = vector.broadcast %cst_11 : f32 to vector<128x32xf32>
    %16 = arith.maximumf %14, %15 : vector<128x32xf32>
    %c0_12 = arith.constant 0 : index
    %c0_13 = arith.constant 0 : index
    %17 = vector.load %arg6[%c0_12, %c0_13] : memref<1x32xf32, #tpu.memory_space<vmem>>, vector<1x32xf32>
    %18 = vector.broadcast %17 : vector<1x32xf32> to vector<128x32xf32>
    %19 = arith.mulf %16, %18 : vector<128x32xf32>
    %cst_14 = arith.constant dense<0.000000e+00> : vector<128xf32>
    %20 = vector.multi_reduction <add>, %19, %cst_14 [1] : vector<128x32xf32> to vector<128xf32>
    %21 = vector.shape_cast %20 : vector<128xf32> to vector<128x1xf32>
    %c0_15 = arith.constant 0 : index
    %22 = memref.load %arg7[%c0_15] : memref<1xf32, #tpu.memory_space<smem>>
    %23 = vector.broadcast %22 : f32 to vector<128x1xf32>
    %24 = arith.addf %21, %23 : vector<128x1xf32>
    %cst_16 = arith.constant 0.000000e+00 : f32
    %25 = vector.broadcast %cst_16 : f32 to vector<128x1xf32>
    %26 = arith.maximumf %24, %25 : vector<128x1xf32>
    %c0_17 = arith.constant 0 : index
    %c0_18 = arith.constant 0 : index
    %27 = vector.load %arg8[%c0_17, %c0_18] : memref<128x1xf32, #tpu.memory_space<vmem>>, vector<128x1xf32>
    tpu.vector_store %arg8[%c0_17, %c0_18], %26 {strides = array<i32>} : memref<128x1xf32, #tpu.memory_space<vmem>>, vector<128x1xf32>,
    return
  }
  func.func @transform_0(%arg0: i32) -> (i32, i32) {
    %c0_i32 = arith.constant 0 : i32
    %c0_i32_0 = arith.constant 0 : i32
    return %arg0, %c0_i32 : i32, i32
  }
  func.func @transform_1(%arg0: i32) -> (i32, i32) {
    %c0_i32 = arith.constant 0 : i32
    %c0_i32_0 = arith.constant 0 : i32
    %c0_i32_1 = arith.constant 0 : i32
    return %c0_i32, %c0_i32_0 : i32, i32
  }
  func.func @transform_2(%arg0: i32) -> (i32, i32) {
    %c0_i32 = arith.constant 0 : i32
    %c0_i32_0 = arith.constant 0 : i32
    %c0_i32_1 = arith.constant 0 : i32
    return %c0_i32, %c0_i32_0 : i32, i32
  }
  func.func @transform_3(%arg0: i32) -> (i32, i32) {
    %c0_i32 = arith.constant 0 : i32
    %c0_i32_0 = arith.constant 0 : i32
    %c0_i32_1 = arith.constant 0 : i32
    return %c0_i32, %c0_i32_0 : i32, i32
  }
  func.func @transform_4(%arg0: i32) -> (i32, i32) {
    %c0_i32 = arith.constant 0 : i32
    %c0_i32_0 = arith.constant 0 : i32
    %c0_i32_1 = arith.constant 0 : i32
    return %c0_i32, %c0_i32_0 : i32, i32
  }
  func.func @transform_5(%arg0: i32) -> (i32, i32) {
    %c0_i32 = arith.constant 0 : i32
    %c0_i32_0 = arith.constant 0 : i32
    %c0_i32_1 = arith.constant 0 : i32
    return %c0_i32, %c0_i32_0 : i32, i32
  }
  func.func @transform_6(%arg0: i32) -> i32 {
    %c0_i32 = arith.constant 0 : i32
    %c0_i32_0 = arith.constant 0 : i32
    return %c0_i32 : i32
  }
  func.func @transform_7(%arg0: i32) -> (i32, i32) {
    %c0_i32 = arith.constant 0 : i32
    %c0_i32_0 = arith.constant 0 : i32
    return %arg0, %c0_i32 : i32, i32
  }
}

</mosaic_0001>

<bundles_post_ra>
// kernel: tpu_custom_call.1
= control target key start
LH: loop header
LB: loop body
LE: loop exit
PB: predicated region body
PF: predicated region fallthrough
CT: control target
= control target key end

     0   :  { %s1667_s0 = inlined_call_operand.vmem [shape: f32[300,16], index: 0, kind: input, shape index: {}]   ;;  %s1668_s1 = inlined_call_operand.vmem [shape: bf16[16,32], index: 1, kind: input, shape index: {}]   ;;  %s1669_s2 = inlined_call_operand.vmem [shape: f32[1,32], index: 2, kind: input, shape index: {}]   ;;  %s1670_s3 = inlined_call_operand.vmem [shape: bf16[32,32], index: 3, kind: input, shape index: {}]   ;;  %s1671_s4 = inlined_call_operand.vmem [shape: f32[1,32], index: 4, kind: input, shape index: {}]   ;;  %s1672_s5 = inlined_call_operand.vmem [shape: f32[1,32], index: 5, kind: input, shape index: {}]   ;;  %s1673_s6 = inlined_call_operand.<no memory space> [shape: f32[1], index: 6, kind: input, shape index: {}]   ;;  %s1674_s7 = inlined_call_operand.vmem [shape: f32[300,1], index: 7, kind: output, shape index: {}]  }
   0x1   :  { %12 = sst [smem:[#allocation2]] %s1673_s6 }
   0x2   :  { %s1373_s26 = smov 0   ;;  %s1375_s27 = smov 0  }
   0x3   :  { %s1377_s28 = smov 0  }
   0x4 LB: > { %s1386_s6 = sadd.s32 4294967295, %s1296_s28   ;;  %s1388_s29 = sadd.s32 1, %s1296_s28   ;;  %s1296_s28 = sphi %s1377_s28, %s1681_s28   ;;  %s1292_s27 = sphi %s1375_s27, %s1680_s27   ;;  %s1288_s26 = sphi %s1373_s26, %s1679_s26  }
   0x5   : > { %s174_s30 = ssub.s32 %s1296_s28, %s1388_s29  ;;  %s177_s8 = sadd.s32 1, %s1292_s27 }
   0x6   : > { %p175_p0 = scmp.eq.s32.totalorder %s174_s30, 0  ;;  %p187_p1 = scmp.ne.s32.totalorder %s1292_s27, %s1288_s26 }
   0x7   : > { %p188_p2 = scmp.eq.s32.totalorder %s1386_s6, 2  ;;  %p1048_p3 = scmp.ge.s32.totalorder %s1296_s28, 1 }
   0x8   : > { %s1396_s9 = scalar_select %p175_p0, %s1292_s27, %s177_s8  }
   0x9   : > { %p1398_p4 = por %p188_p2, %p187_p1  ;;  %p247_p5 = scmp.lt.s32.totalorder %s1296_s28, 4 }
   0xb   : > { %p248_p6 = pnand %p1048_p3, %p247_p5 }
   0xc   : > { %v1239_v0 = vld [vmem:[%s1668_s1] sm:$0xff] (!%p248_p6)   ;;  %s1406_s13 = sshll.u32 (!%p248_p6), %s1386_s6, 4  ;;  %vm341_vm0 = vcmask (!%p248_p6), 130048   ;;  %v1241_v26 = vld [vmem:[%s1670_s3 + $0x8] sm:$0xff] (!%p248_p6)   ;;  %vm510_vm1 = vcmask (!%p248_p6), 261120   ;;  %s719_s11 = sld [smem:[#allocation2]] (!%p248_p6) }
   0xd   : > { %251 = sbr.rel (%p248_p6) target bundleno = 696 (0x2b8), region = 48  ;;  %p287_p7 = scmp.lt.s32.totalorder (!%p248_p6), %s1406_s13, 37  ;;  %1113 = vmatprep.subr.bf16.mxu0 (!%p248_p6), %v1239_v0  ;;  %v1240_v25 = vld [vmem:[%s1670_s3] sm:$0xff] (!%p248_p6)   ;;  %vm753_vm2 = vcmask (!%p248_p6), 7168  }
   0xe   : > { %1114 = vmatpush3.bf16.msra.mxu0 (!%p248_p6), %v1239_v0  ;;  %1131 = vmatprep.subr.bf16.mxu1 (!%p248_p6), %v1240_v25  ;;  %v1052_v27 = vld [vmem:[%s1669_s2] ss:$0 sm:$0xff] (!%p248_p6)  ;;  %s279_s12 = sand.u32 (!%p248_p6), 1, %s1288_s26  }
   0xf   : > { %1132 = vmatpush3.bf16.msra.mxu1 (!%p248_p6), %v1240_v25 }
  0x10   : > { %1133 = vmatprep.subr.bf16.mxu1 (!%p248_p6), %v1241_v26 }
  0x13   : > { %1134 = vmatpush3.bf16.msra.mxu1 (!%p248_p6), %v1241_v26  ;;  %v1466_v26 = vld [vmem:[%s1672_s5] ss:$0 sm:$0xff] (!%p248_p6) }
  0x14   : > { %s288_s14 = scalar_select %p287_p7, %s1406_s13, 37 }
  0x15   : > { %s778_s26 = ssub.s32 (%p1398_p4), 38, %s1406_s13  ;;  %s1091_s16 = sshll.u32 (%p1398_p4), %s1386_s6, 7 }
  0x16   : > { %s1051_s15 = sshll.u32 %s288_s14, 3  ;;  %s1049_s14 = sshll.u32 %s279_s12, 7 }
  0x17   : > { %s1413_s18 = scalar_lea.vmem %s1667_s0, %s1051_s15  ;;  %s1519_s15 = scalar_lea.vmem [#allocation3], %s1049_s14  }
  0x18   : > { %v302_v1 = vld [vmem:[%s1413_s18] sm:$0xff]  ;;  %v303_v2 = vld [vmem:[%s1413_s18 + $0x8] sm:$0xff]  ;;  %v304_v3 = vld [vmem:[%s1413_s18 + $0x10] sm:$0xff]  ;;  %p779_p8 = scmp.lt.s32.totalorder (%p1398_p4), %s778_s26, 16  ;;  %s1574_s19 = scalar_lea.vmem (%p1398_p4), %s1674_s7, %s1091_s16  }
  0x19   : > { %v318_v4 = vpack.c.bf16 %v303_v2, %v302_v1  ;;  %v305_v5 = vld [vmem:[%s1413_s18 + $0x18] sm:$0xff]  ;;  %v306_v6 = vld [vmem:[%s1413_s18 + $0x20] sm:$0xff]  ;;  %v307_v7 = vld [vmem:[%s1413_s18 + $0x28] sm:$0xff] }
  0x1a   : > { %v319_v8 = vpack.c.bf16 %v305_v5, %v304_v3  ;;  %v320_v9 = vpack.c.bf16 %v307_v7, %v306_v6  ;;  %v308_v10 = vld [vmem:[%s1413_s18 + $0x30] sm:$0xff]  ;;  %v309_v11 = vld [vmem:[%s1413_s18 + $0x38] sm:$0xff]  ;;  %v310_v12 = vld [vmem:[%s1413_s18 + $0x40] sm:$0xff] }
  0x1b   : > { %1115 = vmatprep.mubr.msk.bf16.mxu0 %vm341_vm0, %v318_v4  ;;  %v311_v13 = vld [vmem:[%s1413_s18 + $0x48] sm:$0xff]  ;;  %v321_v14 = vpack.c.bf16 %v309_v11, %v308_v10  ;;  %v312_v16 = vld [vmem:[%s1413_s18 + $0x50] sm:$0xff]  ;;  %v313_v17 = vld [vmem:[%s1413_s18 + $0x58] sm:$0xff] }
  0x1c   : > { %1116 = vmatmul.mubr.msk.bf16.vlgmr.msra.gmra.mrb[0].mxu0 %vm341_vm0, %v319_v8  ;;  %v322_v15 = vpack.c.bf16 %v311_v13, %v310_v12  ;;  %v314_v18 = vld [vmem:[%s1413_s18 + $0x60] sm:$0xff]  ;;  %v315_v19 = vld [vmem:[%s1413_s18 + $0x68] sm:$0xff]  ;;  %v323_v20 = vpack.c.bf16 %v313_v17, %v312_v16  ;;  %v316_v22 = vld [vmem:[%s1413_s18 + $0x70] sm:$0xff] }
  0x1d   : > { %1119 = vmatprep.mubr.msk.bf16.mxu0 %vm341_vm0, %v320_v9  ;;  %v324_v21 = vpack.c.bf16 %v315_v19, %v314_v18  ;;  %v317_v23 = vld [vmem:[%s1413_s18 + $0x78] sm:$0xff] }
  0x1e   : > { %v325_v24 = vpack.c.bf16 %v317_v23, %v316_v22 }
  0x24   : > { %1120 = vmatmul.mubr.msk.bf16.gmra.mrb[4].mxu0 %vm341_vm0, %v321_v14 }
  0x25   : > { %1123 = vmatprep.mubr.msk.bf16.mxu0 %vm341_vm0, %v322_v15 }
  0x2c   : > { %1124 = vmatmul.mubr.msk.bf16.gmra.mrb[8].mxu0 %vm341_vm0, %v323_v20  ;;  %v1459_v20 = vld [vmem:[%s1671_s4] ss:$0 sm:$0xff] }
  0x2d   : > { %1127 = vmatprep.mubr.msk.bf16.mxu0 %vm341_vm0, %v324_v21 }
  0x34   : > { %1128 = vmatmul.mubr.msk.bf16.gmra.mrb[12].mxu0 %vm341_vm0, %v325_v24 }
  0xef   : > { %v1117_v28 = vpop.f32.mrb[0].mxu0 }
  0xf0   : > { %v409_v29 = vadd.f32 %v1117_v28, %v1052_v27  ;;  %v400_v30 = vpop.f32.mrb[1].mxu0 }
  0xf1   : > { %v401_v31 = vadd.f32 %v1052_v27, %v400_v30  ;;  %v1118_v32 = vpop.f32.mrb[2].mxu0 }
  0xf2   : > { %v412_v33 = vadd.f32 %v1118_v32, %v1052_v27  ;;  %v403_v34 = vpop.f32.mrb[3].mxu0  ;;  %v465_v36 = vmax.f32 %v409_v29, 0.0 }
  0xf3   : > { %v404_v35 = vadd.f32 %v1052_v27, %v403_v34  ;;  %v463_v38 = vmax.f32 %v401_v31, 0.0 }
  0xf4   : > { %v466_v37 = vmax.f32 %v412_v33, 0.0 }
  0xf5   : > { %v464_v39 = vmax.f32 %v404_v35, 0.0 }
  0xf6   : > { %v480_v40 = vpack.c.bf16 %v466_v37, %v465_v36 }
  0xf7   : > { %v1121_v41 = vpop.f32.mrb[4].mxu0  ;;  %v479_v42 = vpack.c.bf16 %v464_v39, %v463_v38 }
  0xf8   : > { %v425_v43 = vadd.f32 %v1121_v41, %v1052_v27  ;;  %v416_v44 = vpop.f32.mrb[5].mxu0 }
  0xf9   : > { %v417_v45 = vadd.f32 %v1052_v27, %v416_v44  ;;  %v1122_v46 = vpop.f32.mrb[6].mxu0  ;;  %1135 = vmatprep.mubr.msk.bf16.mxu1 %vm510_vm1, %v479_v42 }
  0xfa   : > { %v428_v47 = vadd.f32 %v1122_v46, %v1052_v27  ;;  %v419_v48 = vpop.f32.mrb[7].mxu0  ;;  %1136 = vmatmul.mubr.msk.bf16.vlgmr.msra.gmra.mrb[0].mxu1 %vm510_vm1, %v480_v40  ;;  %v469_v50 = vmax.f32 %v425_v43, 0.0 }
  0xfb   : > { %v420_v49 = vadd.f32 %v1052_v27, %v419_v48  ;;  %v467_v52 = vmax.f32 %v417_v45, 0.0 }
  0xfc   : > { %v470_v51 = vmax.f32 %v428_v47, 0.0 }
  0xfd   : > { %v468_v53 = vmax.f32 %v420_v49, 0.0 }
  0xfe   : > { %v482_v54 = vpack.c.bf16 %v470_v51, %v469_v50 }
  0xff   : > { %v481_v55 = vpack.c.bf16 %v468_v53, %v467_v52  ;;  %v1125_v56 = vpop.f32.mrb[8].mxu0 }
 0x100   : > { %v441_v57 = vadd.f32 %v1125_v56, %v1052_v27  ;;  %v432_v58 = vpop.f32.mrb[9].mxu0 }
 0x101   : > { %v433_v59 = vadd.f32 %v1052_v27, %v432_v58  ;;  %v1126_v60 = vpop.f32.mrb[10].mxu0  ;;  %1139 = vmatprep.mubr.msk.bf16.mxu1 %vm510_vm1, %v481_v55 }
 0x102   : > { %v444_v61 = vadd.f32 %v1126_v60, %v1052_v27  ;;  %v435_v62 = vpop.f32.mrb[11].mxu0  ;;  %1140 = vmatmul.mubr.msk.bf16.gmra.mrb[4].mxu1 %vm510_vm1, %v482_v54  ;;  %v473_v0 = vmax.f32 %v441_v57, 0.0 }
 0x103   : > { %v436_v63 = vadd.f32 %v1052_v27, %v435_v62  ;;  %v471_v2 = vmax.f32 %v433_v59, 0.0 }
 0x104   : > { %v474_v1 = vmax.f32 %v444_v61, 0.0 }
 0x105   : > { %v472_v3 = vmax.f32 %v436_v63, 0.0 }
 0x106   : > { %v484_v4 = vpack.c.bf16 %v474_v1, %v473_v0 }
 0x107   : > { %v483_v5 = vpack.c.bf16 %v472_v3, %v471_v2  ;;  %v1129_v6 = vpop.f32.mrb[12].mxu0 }
 0x108   : > { %v457_v7 = vadd.f32 %v1129_v6, %v1052_v27  ;;  %v448_v8 = vpop.f32.mrb[13].mxu0 }
 0x109   : > { %v449_v9 = vadd.f32 %v1052_v27, %v448_v8  ;;  %v1130_v10 = vpop.f32.mrb[14].mxu0  ;;  %1143 = vmatprep.mubr.msk.bf16.mxu1 %vm510_vm1, %v483_v5 }
 0x10a   : > { %v460_v11 = vadd.f32 %v1130_v10, %v1052_v27  ;;  %v451_v12 = vpop.f32.mrb[15].mxu0  ;;  %1144 = vmatmul.mubr.msk.bf16.gmra.mrb[8].mxu1 %vm510_vm1, %v484_v4  ;;  %v477_v14 = vmax.f32 %v457_v7, 0.0 }
 0x10b   : > { %v452_v13 = vadd.f32 %v1052_v27, %v451_v12  ;;  %v475_v16 = vmax.f32 %v449_v9, 0.0 }
 0x10c   : > { %v478_v15 = vmax.f32 %v460_v11, 0.0 }
 0x10d   : > { %v476_v17 = vmax.f32 %v452_v13, 0.0 }
 0x10e   : > { %v486_v18 = vpack.c.bf16 %v478_v15, %v477_v14 }
 0x10f   : > { %v485_v19 = vpack.c.bf16 %v476_v17, %v475_v16 }
 0x111   : > { %1147 = vmatprep.mubr.msk.bf16.mxu1 %vm510_vm1, %v485_v19 }
 0x112   : > { %1148 = vmatmul.mubr.msk.bf16.gmra.mrb[12].mxu1 %vm510_vm1, %v486_v18 }
 0x1cd   : > { %v1137_v21 = vpop.f32.mrb[0].mxu1 }
 0x1ce   : > { %v578_v22 = vadd.f32 %v1137_v21, %v1459_v20  ;;  %v569_v23 = vpop.f32.mrb[1].mxu1 }
 0x1cf   : > { %v570_v24 = vadd.f32 %v1459_v20, %v569_v23  ;;  %v1138_v25 = vpop.f32.mrb[2].mxu1 }
 0x1d0   : > { %v634_v27 = vmax.f32 %v578_v22, 0.0  ;;  %v581_v28 = vadd.f32 %v1138_v25, %v1459_v20  ;;  %v572_v29 = vpop.f32.mrb[3].mxu1 }
 0x1d1   : > { %v632_v30 = vmax.f32 %v570_v24, 0.0  ;;  %v573_v31 = vadd.f32 %v1459_v20, %v572_v29 }
 0x1d2   : > { %v635_v32 = vmax.f32 %v581_v28, 0.0  ;;  %v657_v33 = vmul.f32 %v1466_v26, %v634_v27 }
 0x1d3   : > { %v633_v34 = vmax.f32 %v573_v31, 0.0  ;;  %v655_v35 = vmul.f32 %v1466_v26, %v632_v30 }
 0x1d4   : > { %v677_v36 = vsel %vm510_vm1, %v657_v33, 0.0  ;;  %v658_v37 = vmul.f32 %v1466_v26, %v635_v32 }
 0x1d5   : > { %678 = vadd.xlane.f32.xlu1 %v677_v36  ;;  %v1141_v38 = vpop.f32.mrb[4].mxu1  ;;  %v671_v39 = vsel %vm510_vm1, %v655_v35, 0.0  ;;  %v656_v40 = vmul.f32 %v1466_v26, %v633_v34 }
 0x1d6   : > { %v594_v41 = vadd.f32 %v1141_v38, %v1459_v20  ;;  %v585_v42 = vpop.f32.mrb[5].mxu1  ;;  %672 = vadd.xlane.f32.xlu0 %v671_v39  ;;  %v680_v48 = vsel %vm510_vm1, %v658_v37, 0.0  ;;  %v1515_v39 = vstv %s719_s11 }
 0x1d7   : > { %v586_v43 = vadd.f32 %v1459_v20, %v585_v42  ;;  %v1142_v44 = vpop.f32.mrb[6].mxu1  ;;  %v674_v51 = vsel %vm510_vm1, %v656_v40, 0.0 }
 0x1d8   : > { %v638_v45 = vmax.f32 %v594_v41, 0.0  ;;  %v597_v46 = vadd.f32 %v1142_v44, %v1459_v20  ;;  %v588_v47 = vpop.f32.mrb[7].mxu1 }
 0x1d9   : > { %v636_v49 = vmax.f32 %v586_v43, 0.0  ;;  %v589_v50 = vadd.f32 %v1459_v20, %v588_v47  ;;  %681 = vadd.xlane.f32.xlu1 %v680_v48 }
 0x1da   : > { %v639_v52 = vmax.f32 %v597_v46, 0.0  ;;  %675 = vadd.xlane.f32.xlu0 %v674_v51  ;;  %v661_v53 = vmul.f32 %v1466_v26, %v638_v45 }
 0x1db   : > { %v637_v54 = vmax.f32 %v589_v50, 0.0  ;;  %v659_v58 = vmul.f32 %v1466_v26, %v636_v49 }
 0x1dc   : > { %v689_v55 = vsel %vm510_vm1, %v661_v53, 0.0  ;;  %v662_v56 = vmul.f32 %v1466_v26, %v639_v52 }
 0x1dd   : > { %v1145_v57 = vpop.f32.mrb[8].mxu1  ;;  %v660_v62 = vmul.f32 %v1466_v26, %v637_v54  ;;  %v683_v6 = vsel %vm510_vm1, %v659_v58, 0.0 }
 0x1de   : > { %v610_v59 = vadd.f32 %v1145_v57, %v1459_v20  ;;  %v601_v60 = vpop.f32.mrb[9].mxu1  ;;  %690 = vadd.xlane.f32.xlu0 %v689_v55  ;;  %v692_v61 = vsel %vm510_vm1, %v662_v56, 0.0 }
 0x1df   : > { %v602_v63 = vadd.f32 %v1459_v20, %v601_v60  ;;  %693 = vadd.xlane.f32.xlu1 %v692_v61  ;;  %v1146_v0 = vpop.f32.mrb[10].mxu1  ;;  %v686_v8 = vsel %vm510_vm1, %v660_v62, 0.0 }
 0x1e0   : > { %v642_v1 = vmax.f32 %v610_v59, 0.0  ;;  %v613_v2 = vadd.f32 %v1146_v0, %v1459_v20  ;;  %v604_v3 = vpop.f32.mrb[11].mxu1 }
 0x1e1   : > { %v640_v4 = vmax.f32 %v602_v63, 0.0  ;;  %v605_v5 = vadd.f32 %v1459_v20, %v604_v3 }
 0x1e2   : > { %v643_v7 = vmax.f32 %v613_v2, 0.0  ;;  %684 = vadd.xlane.f32.xlu0 %v683_v6  ;;  %v665_v9 = vmul.f32 %v1466_v26, %v642_v1 }
 0x1e3   : > { %v641_v10 = vmax.f32 %v605_v5, 0.0  ;;  %687 = vadd.xlane.f32.xlu1 %v686_v8  ;;  %v663_v14 = vmul.f32 %v1466_v26, %v640_v4 }
 0x1e4   : > { %v701_v11 = vsel %vm510_vm1, %v665_v9, 0.0  ;;  %v666_v12 = vmul.f32 %v1466_v26, %v643_v7 }
 0x1e5   : > { %v1149_v13 = vpop.f32.mrb[12].mxu1  ;;  %v664_v18 = vmul.f32 %v1466_v26, %v641_v10  ;;  %v695_v28 = vsel %vm510_vm1, %v663_v14, 0.0 }
 0x1e6   : > { %v626_v15 = vadd.f32 %v1149_v13, %v1459_v20  ;;  %v617_v16 = vpop.f32.mrb[13].mxu1  ;;  %702 = vadd.xlane.f32.xlu0 %v701_v11  ;;  %v704_v17 = vsel %vm510_vm1, %v666_v12, 0.0 }
 0x1e7   : > { %v618_v19 = vadd.f32 %v1459_v20, %v617_v16  ;;  %v1150_v21 = vpop.f32.mrb[14].mxu1  ;;  %705 = vadd.xlane.f32.xlu1 %v704_v17  ;;  %v698_v29 = vsel %vm510_vm1, %v664_v18, 0.0 }
 0x1e8   : > { %v629_v22 = vadd.f32 %v1150_v21, %v1459_v20  ;;  %v620_v23 = vpop.f32.mrb[15].mxu1  ;;  %v646_v24 = vmax.f32 %v626_v15, 0.0 }
 0x1e9   : > { %v644_v25 = vmax.f32 %v618_v19, 0.0  ;;  %v621_v27 = vadd.f32 %v1459_v20, %v620_v23 }
 0x1ea   : > { %696 = vadd.xlane.f32.xlu0 %v695_v28  ;;  %v647_v30 = vmax.f32 %v629_v22, 0.0  ;;  %v669_v35 = vmul.f32 %v1466_v26, %v646_v24 }
 0x1eb   : > { %v645_v31 = vmax.f32 %v621_v27, 0.0  ;;  %699 = vadd.xlane.f32.xlu1 %v698_v29  ;;  %v667_v32 = vmul.f32 %v1466_v26, %v644_v25 }
 0x1ec   : > { %v670_v36 = vmul.f32 %v1466_v26, %v647_v30  ;;  %v713_v37 = vsel %vm510_vm1, %v669_v35, 0.0 }
 0x1ed   : > { %v707_v33 = vsel %vm510_vm1, %v667_v32, 0.0  ;;  %v668_v34 = vmul.f32 %v1466_v26, %v645_v31 }
 0x1ee   : > { %708 = vadd.xlane.f32.xlu0 %v707_v33  ;;  %v716_v38 = vsel %vm510_vm1, %v670_v36, 0.0 }
 0x1ef   : > { %v710_v20 = vsel %vm510_vm1, %v668_v34, 0.0 }
 0x1f0   : > { %711 = vadd.xlane.f32.xlu1 %v710_v20 }
 0x1f2   : > { %714 = vadd.xlane.f32.xlu0 %v713_v37 }
 0x1f4   : > { %717 = vadd.xlane.f32.xlu1 %v716_v38 }
 0x262   : > { %v679_v40 = vpop.xlane.xlu1 %678 }
 0x263   : > { %v723_v41 = vadd.f32 %v1515_v39, %v679_v40  ;;  %v673_v42 = vpop.xlane.xlu0 %672 }
 0x264   : > { %v721_v43 = vadd.f32 %v1515_v39, %v673_v42 }
 0x265   : > { %v739_v26 = vmax.f32 %v723_v41, 0.0 }
 0x266   : > { %v737_v44 = vmax.f32 %v721_v43, 0.0  ;;  %v682_v45 = vpop.xlane.xlu1 %681 }
 0x267   : > { %756 = vst.msk [vmem:[%s1519_s15 + $0x10] sm:$0xff] %vm753_vm2, %v739_v26  ;;  %v724_v46 = vadd.f32 %v1515_v39, %v682_v45  ;;  %v676_v47 = vpop.xlane.xlu0 %675 }
 0x268   : > { %754 = vst.msk [vmem:[%s1519_s15] sm:$0xff] %vm753_vm2, %v737_v44  ;;  %v722_v48 = vadd.f32 %v1515_v39, %v676_v47 }
 0x269   : > { %v740_v49 = vmax.f32 %v724_v46, 0.0 }
 0x26a   : > { %v738_v50 = vmax.f32 %v722_v48, 0.0 }
 0x26b   : > { %757 = vst.msk [vmem:[%s1519_s15 + $0x18] sm:$0xff] %vm753_vm2, %v740_v49  ;;  %v691_v51 = vpop.xlane.xlu0 %690 }
 0x26c   : > { %755 = vst.msk [vmem:[%s1519_s15 + $0x8] sm:$0xff] %vm753_vm2, %v738_v50  ;;  %v727_v52 = vadd.f32 %v1515_v39, %v691_v51  ;;  %v694_v53 = vpop.xlane.xlu1 %693 }
 0x26d   : > { %v728_v54 = vadd.f32 %v1515_v39, %v694_v53 }
 0x26e   : > { %v743_v55 = vmax.f32 %v727_v52, 0.0 }
 0x26f   : > { %v744_v56 = vmax.f32 %v728_v54, 0.0  ;;  %v685_v57 = vpop.xlane.xlu0 %684 }
 0x270   : > { %760 = vst.msk [vmem:[%s1519_s15 + $0x30] sm:$0xff] %vm753_vm2, %v743_v55  ;;  %v725_v58 = vadd.f32 %v1515_v39, %v685_v57  ;;  %v688_v59 = vpop.xlane.xlu1 %687 }
 0x271   : > { %761 = vst.msk [vmem:[%s1519_s15 + $0x38] sm:$0xff] %vm753_vm2, %v744_v56  ;;  %v726_v60 = vadd.f32 %v1515_v39, %v688_v59 }
 0x272   : > { %v741_v61 = vmax.f32 %v725_v58, 0.0 }
 0x273   : > { %v742_v62 = vmax.f32 %v726_v60, 0.0  ;;  %v703_v63 = vpop.xlane.xlu0 %702 }
 0x274   : > { %758 = vst.msk [vmem:[%s1519_s15 + $0x20] sm:$0xff] %vm753_vm2, %v741_v61  ;;  %v731_v0 = vadd.f32 %v1515_v39, %v703_v63  ;;  %v706_v1 = vpop.xlane.xlu1 %705 }
 0x275   : > { %759 = vst.msk [vmem:[%s1519_s15 + $0x28] sm:$0xff] %vm753_vm2, %v742_v62  ;;  %v732_v2 = vadd.f32 %v1515_v39, %v706_v1 }
 0x276   : > { %v747_v3 = vmax.f32 %v731_v0, 0.0 }
 0x277   : > { %v748_v4 = vmax.f32 %v732_v2, 0.0  ;;  %v697_v5 = vpop.xlane.xlu0 %696 }
 0x278   : > { %764 = vst.msk [vmem:[%s1519_s15 + $0x50] sm:$0xff] %vm753_vm2, %v747_v3  ;;  %v729_v6 = vadd.f32 %v1515_v39, %v697_v5  ;;  %v700_v7 = vpop.xlane.xlu1 %699 }
 0x279   : > { %765 = vst.msk [vmem:[%s1519_s15 + $0x58] sm:$0xff] %vm753_vm2, %v748_v4  ;;  %v730_v8 = vadd.f32 %v1515_v39, %v700_v7 }
 0x27a   : > { %v745_v9 = vmax.f32 %v729_v6, 0.0 }
 0x27b   : > { %v746_v10 = vmax.f32 %v730_v8, 0.0  ;;  %v709_v11 = vpop.xlane.xlu0 %708 }
 0x27c   : > { %762 = vst.msk [vmem:[%s1519_s15 + $0x40] sm:$0xff] %vm753_vm2, %v745_v9  ;;  %v733_v12 = vadd.f32 %v1515_v39, %v709_v11 }
 0x27d   : > { %763 = vst.msk [vmem:[%s1519_s15 + $0x48] sm:$0xff] %vm753_vm2, %v746_v10  ;;  %v712_v13 = vpop.xlane.xlu1 %711 }
 0x27e   : > { %v749_v14 = vmax.f32 %v733_v12, 0.0  ;;  %v734_v15 = vadd.f32 %v1515_v39, %v712_v13 }
 0x27f   : > { %v715_v16 = vpop.xlane.xlu0 %714 }
 0x280   : > { %766 = vst.msk [vmem:[%s1519_s15 + $0x60] sm:$0xff] %vm753_vm2, %v749_v14  ;;  %v750_v17 = vmax.f32 %v734_v15, 0.0  ;;  %v735_v18 = vadd.f32 %v1515_v39, %v715_v16  ;;  %776 = sbr.rel (!%p1398_p4) target bundleno = 696 (0x2b8), region = 52 }
 0x281   : > { %v718_v19 = vpop.xlane.xlu1 %717 }
 0x282   : > { %767 = vst.msk [vmem:[%s1519_s15 + $0x68] sm:$0xff] %vm753_vm2, %v750_v17  ;;  %v751_v21 = vmax.f32 %v735_v18, 0.0  ;;  %v736_v22 = vadd.f32 %v1515_v39, %v718_v19 }
 0x284   : > { %768 = vst.msk [vmem:[%s1519_s15 + $0x70] sm:$0xff] %vm753_vm2, %v751_v21  ;;  %v752_v23 = vmax.f32 %v736_v22, 0.0 }
 0x286   : > { %769 = vst.msk [vmem:[%s1519_s15 + $0x78] sm:$0xff] %vm753_vm2, %v752_v23 }
 0x287   : > { %s1683_s26 = smov (!%p779_p8, %s778_s26), 16 }
 0x288   : > { %s1076_s20 = sshll.u32 %s1683_s26, 7 }
 0x289   : > { %p1079_p9 = scmp.eq.s32.totalorder %s1076_s20, 0 }
 0x28a   : > { %s1580_s21 = sshrl.u32 (!%p1079_p9), %s1683_s26, 4 }
 0x28b   : > { %787 = sbr.rel (%p1079_p9) target bundleno = 696 (0x2b8), region = 56  ;;  %p1080_p10 = scmp.le.s32.totalorder (!%p1079_p9), %s1580_s21, 0 }
 0x292   : > { %1001 = sbr.rel (%p1080_p10) target bundleno = 675 (0x2a3), region = 132  ;;  %s1676_s6 = smov (!%p1080_p10), %s1574_s19 }
 0x293   : > { %s1677_s10 = smov (!%p1080_p10), %s1519_s15  ;;  %s1589_s13 = smov (!%p1080_p10), 0  }
 0x294   : > { %s1591_s22 = smov (!%p1080_p10), 0  }
 0x299 LB: >> { %v879_v24 = vld [vmem:[%s1304_s10] sm:$0xff]  ;;  %v881_v25 = vld [vmem:[%s1304_s10 + $0x8] sm:$0xff]  ;;  %v883_v27 = vld [vmem:[%s1304_s10 + $0x10] sm:$0xff]  ;;  %s911_s23 = sadd.s32 1, %s1308_s13  ;;  %s873_s22 = sadd.s32 1, %s1312_s22   ;;  %s1312_s22 = sphi %s1591_s22, %s873_s22   ;;  %s1308_s13 = sphi %s1589_s13, %s1678_s13   ;;  %s1304_s10 = sphi %s1677_s10, %s916_s10   ;;  %s1300_s6 = sphi %s1676_s6, %s917_s6  }
 0x29a   : >> { %880 = vst [vmem:[%s1300_s6] sm:$0xff] %v879_v24  ;;  %882 = vst [vmem:[%s1300_s6 + $0x8] sm:$0xff] %v881_v25  ;;  %v885_v28 = vld [vmem:[%s1304_s10 + $0x18] sm:$0xff]  ;;  %v887_v29 = vld [vmem:[%s1304_s10 + $0x20] sm:$0xff]  ;;  %p912_p11 = scmp.ge.s32.totalorder %s911_s23, %s1580_s21  ;;  %p872_p12 = scmp.ge.s32.totalorder %s873_s22, %s1580_s21 }
 0x29b   : >> { %884 = vst [vmem:[%s1300_s6 + $0x10] sm:$0xff] %v883_v27  ;;  %v889_v30 = vld [vmem:[%s1304_s10 + $0x28] sm:$0xff]  ;;  %886 = vst [vmem:[%s1300_s6 + $0x18] sm:$0xff] %v885_v28  ;;  %v891_v31 = vld [vmem:[%s1304_s10 + $0x30] sm:$0xff] }
 0x29c   : >> { %888 = vst [vmem:[%s1300_s6 + $0x20] sm:$0xff] %v887_v29  ;;  %890 = vst [vmem:[%s1300_s6 + $0x28] sm:$0xff] %v889_v30  ;;  %v893_v32 = vld [vmem:[%s1304_s10 + $0x38] sm:$0xff]  ;;  %v895_v33 = vld [vmem:[%s1304_s10 + $0x40] sm:$0xff]  ;;  %s1685_s23 = smov (%p912_p11, %s911_s23), 0  ;;  %875 = sbr.rel (!%p872_p12) target bundleno = 665 (0x299), region = 138 }
 0x29d   : >> { %892 = vst [vmem:[%s1300_s6 + $0x30] sm:$0xff] %v891_v31  ;;  %894 = vst [vmem:[%s1300_s6 + $0x38] sm:$0xff] %v893_v32  ;;  %v897_v34 = vld [vmem:[%s1304_s10 + $0x48] sm:$0xff]  ;;  %v899_v35 = vld [vmem:[%s1304_s10 + $0x50] sm:$0xff]  ;;  %s1081_s24 = sshll.u32 %s1685_s23, 7  ;;  %s1678_s13 = smov %s1685_s23 }
 0x29e   : >> { %896 = vst [vmem:[%s1300_s6 + $0x40] sm:$0xff] %v895_v33  ;;  %v901_v20 = vld [vmem:[%s1304_s10 + $0x58] sm:$0xff]  ;;  %898 = vst [vmem:[%s1300_s6 + $0x48] sm:$0xff] %v897_v34  ;;  %v903_v36 = vld [vmem:[%s1304_s10 + $0x60] sm:$0xff] }
 0x29f   : >> { %900 = vst [vmem:[%s1300_s6 + $0x50] sm:$0xff] %v899_v35  ;;  %902 = vst [vmem:[%s1300_s6 + $0x58] sm:$0xff] %v901_v20  ;;  %v905_v37 = vld [vmem:[%s1304_s10 + $0x68] sm:$0xff]  ;;  %v907_v38 = vld [vmem:[%s1304_s10 + $0x70] sm:$0xff] }
 0x2a0   : >> { %904 = vst [vmem:[%s1300_s6 + $0x60] sm:$0xff] %v903_v36  ;;  %906 = vst [vmem:[%s1300_s6 + $0x68] sm:$0xff] %v905_v37  ;;  %v909_v39 = vld [vmem:[%s1304_s10 + $0x78] sm:$0xff]  ;;  %s916_s10 = scalar_lea.vmem %s1519_s15, %s1081_s24 [#allocation3]  }
 0x2a1   : >> { %908 = vst [vmem:[%s1300_s6 + $0x70] sm:$0xff] %v907_v38  ;;  %910 = vst [vmem:[%s1300_s6 + $0x78] sm:$0xff] %v909_v39  ;;  %s917_s6 = scalar_lea.vmem %s1574_s19, %s1081_s24  }
 0x2a3 PF: > { %s1649_s25 = sand.u32 15, %s1683_s26   ;;  %s1092_s28 = sshll.u32 %s1580_s21, 7 }
 0x2a4   : > { %s922_s30 = scalar_lea.vmem %s1519_s15, %s1092_s28 [#allocation3]   ;;  %s924_s8 = scalar_lea.vmem %s1574_s19, %s1092_s28  }
 0x2a5   : > { %p1086_p13 = scmp.le.s32.totalorder %s1649_s25, 0 }
 0x2a6   : > { %s1314_s11 = smov (!%p1086_p13), %s924_s8   ;;  %s1318_s12 = smov (!%p1086_p13), %s922_s30  }
 0x2a7   : > { %1015 = sbr.rel (%p1086_p13) target bundleno = 696 (0x2b8), region = 143  ;;  %s1322_s14 = smov (!%p1086_p13), 0  }
 0x2a8   : > { %s1326_s16 = smov (!%p1086_p13), 0  }
 0x2ae LB: >> { %v934_v40 = vld [vmem:[%s1320_s12] sm:$0xff]  ;;  %s936_s26 = sadd.s32 1, %s1324_s14  ;;  %s928_s16 = sadd.s32 1, %s1328_s16   ;;  %s1328_s16 = sphi %s1326_s16, %s928_s16   ;;  %s1324_s14 = sphi %s1322_s14, %s1323_s14   ;;  %s1320_s12 = sphi %s1318_s12, %s941_s12   ;;  %s1316_s11 = sphi %s1314_s11, %s942_s11  }
 0x2af   : >> { %935 = vst [vmem:[%s1316_s11] sm:$0xff] %v934_v40  ;;  %p937_p0 = scmp.ge.s32.totalorder %s936_s26, %s1649_s25  ;;  %p927_p1 = scmp.ge.s32.totalorder %s928_s16, %s1649_s25 }
 0x2b1   : >> { %s1687_s26 = smov (%p937_p0, %s936_s26), 0  ;;  %930 = sbr.rel (!%p927_p1) target bundleno = 686 (0x2ae), region = 149 }
 0x2b2   : >> { %s1087_s15 = sshll.u32 %s1687_s26, 3  ;;  %s1323_s14 = smov %s1687_s26  }
 0x2b3   : >> { %s941_s12 = scalar_lea.vmem %s922_s30, %s1087_s15 [#allocation3]   ;;  %s942_s11 = scalar_lea.vmem %s924_s8, %s1087_s15  }
 0x2b8 PF: > { %p15_p2 = scmp.ge.s32.totalorder %s1388_s29, 5   ;;  %s1679_s26 = smov %s1292_s27 }
 0x2b9   : > { %s1680_s27 = smov %s1396_s9  ;;  %s1681_s28 = smov %s1388_s29 }
 0x2ba   :  { %17 = sbr.rel (!%p15_p2) target bundleno = 4 (0x4), region = 160 }

</bundles_post_ra>
